<compile_context>
chip_gen: v7x
topology: tpu7x:2x2x1
jax: 0.10.0
libtpu: 0.0.40
codegen_flags: <defaults>
</compile_context>

<pallas_src>
import functools
import math

import numpy as np
import jax
import jax.numpy as jnp
from jax.experimental import pallas as pl
from jax.experimental.pallas import tpu as pltpu

IMAGENET_MEAN = (0.485, 0.456, 0.406)
IMAGENET_STD = (0.229, 0.224, 0.225)

_SUBLANE = 8
_LANE = 128
_TARGET_PADDED_TILE_BYTES = 4 * 1024 * 1024   # per-array padded VMEM tile target
_VMEM_LIMIT_BYTES = 32 * 1024 * 1024          # scoped VMEM limit; safe on v5e/v6e/v7x
_MIN_GRID_STEPS = 4                           # prefer a few steps for DMA/compute overlap


def _round_up(x: int, m: int) -> int:
    return (x + m - 1) // m * m


# ---------------------------------------------------------------------------
# Lane-dense kernel: rows = (image, channel) planes, lanes = flattened H*W.
# ---------------------------------------------------------------------------
def _collate_dense_kernel(mean_ref, inv_std_ref, x_ref, weak_ref, plain_ref, *, width):
    # x_ref: (BR, L), L = H*W.  mean_ref / inv_std_ref: (BR, 1) per-row constants.
    norm = (x_ref[...] - mean_ref[...]) * inv_std_ref[...]   # Normalize (ToTensor'd input)
    plain_ref[...] = norm                                    # no-augment view

    # RandomHorizontalFlip(p=1.0): within each W-segment of the flattened lane
    # axis reverse the order, i.e. p -> p XOR (W-1) for power-of-two W.
    # Decompose the XOR bit-by-bit: each stage swaps elements at distance 2^b
    # via two lane rotations (XLU) and a select (VPU) -- fully lane-dense.
    lane = jax.lax.broadcasted_iota(jnp.int32, norm.shape, dimension=1)
    length = norm.shape[1]
    flipped = norm
    step = 1
    while step < width:
        up = pltpu.roll(flipped, shift=step, axis=1)            # up[p]   = flipped[p - step]
        down = pltpu.roll(flipped, shift=length - step, axis=1)  # down[p] = flipped[p + step]
        flipped = jnp.where((lane & step) != 0, up, down)
        step *= 2
    weak_ref[...] = flipped
    # TODO(synk): RandAugmentMC(n=6, m=10) (random color/geometric policy) has no
    # deterministic Pallas equivalent; the strong view aliases weak in the wrapper.


# ---------------------------------------------------------------------------
# Fallback kernel (non power-of-two W): W stays on the lane axis, flip = ::-1.
# ---------------------------------------------------------------------------
def _collate_nchw_kernel(mean_ref, inv_std_ref, x_ref, weak_ref, plain_ref):
    # x_ref: (BN, C, H, W); mean_ref / inv_std_ref: (1, C, 1, 1).
    norm = (x_ref[...] - mean_ref[...]) * inv_std_ref[...]
    plain_ref[...] = norm
    weak_ref[...] = norm[..., ::-1]   # lane-axis reversal


def _pick_bn_dense(n: int, c: int, l: int):
    """Images per block for the lane-dense path; None -> single whole block."""
    sub_mult = _SUBLANE // math.gcd(c, _SUBLANE)   # smallest bn with (bn*c) % 8 == 0

    def tile_bytes(bn):
        return _round_up(bn * c, _SUBLANE) * _round_up(l, _LANE) * 4

    bn = sub_mult
    while bn + sub_mult <= n and tile_bytes(bn + sub_mult) <= _TARGET_PADDED_TILE_BYTES:
        bn += sub_mult
    # Prefer several grid steps (pipelining / megacore) if aligned blocks allow it.
    for steps in (_MIN_GRID_STEPS, 2):
        aligned = (n // steps) // sub_mult * sub_mult
        if aligned >= sub_mult:
            bn = min(bn, aligned)
            break
    if bn > n or (bn * c) % _SUBLANE != 0:
        return None
    return bn


def pallas_collate_images(images: jnp.ndarray,
                          mean=IMAGENET_MEAN,
                          std=IMAGENET_STD):
    """images: (N, C, H, W) float32 in [0, 1] (post-ToTensor).

    Returns (weak, strong, plain); strong aliases weak (RandAugmentMC TODO).
    """
    n, c, h, w = images.shape
    mean_np = np.asarray(mean, dtype=np.float32).reshape(c)
    inv_std_np = (1.0 / np.asarray(std, dtype=np.float32)).reshape(c).astype(np.float32)

    cp = pltpu.CompilerParams(
        dimension_semantics=("parallel",),
        vmem_limit_bytes=_VMEM_LIMIT_BYTES)

    lane_dense = w > 0 and (w & (w - 1)) == 0   # power-of-two W -> XOR flip trick

    if lane_dense:
        l = h * w
        rows = n * c
        bn = _pick_bn_dense(n, c, l)
        if bn is None:
            bn = n                               # single whole-array block
        br = bn * c
        grid = (pl.cdiv(n, bn),)

        x2d = images.reshape(rows, l)
        mean_col = jnp.asarray(np.tile(mean_np, bn).reshape(br, 1))
        inv_col = jnp.asarray(np.tile(inv_std_np, bn).reshape(br, 1))

        img_spec = pl.BlockSpec((br, l), lambda i: (i, 0))
        const_spec = pl.BlockSpec((br, 1), lambda i: (0, 0))
        out_sds = jax.ShapeDtypeStruct((rows, l), jnp.float32)

        weak2d, plain2d = pl.pallas_call(
            functools.partial(_collate_dense_kernel, width=w),
            out_shape=(out_sds, out_sds),
            grid=grid,
            in_specs=[const_spec, const_spec, img_spec],
            out_specs=(img_spec, img_spec),
            compiler_params=cp,
        )(mean_col, inv_col, x2d)

        weak = weak2d.reshape(n, c, h, w)
        plain = plain2d.reshape(n, c, h, w)
    else:
        # TODO(synk): non power-of-two W falls back to W-on-lanes layout
        # (lane-sparse stores when W < 128).
        def tile_bytes(bn_):
            return bn_ * c * _round_up(h, _SUBLANE) * _round_up(w, _LANE) * 4

        bn = 1
        while bn < n and tile_bytes(bn + 1) <= _TARGET_PADDED_TILE_BYTES:
            bn += 1
        bn = max(1, min(bn, max(1, n // 2)))     # keep >= 2 blocks when possible
        grid = (pl.cdiv(n, bn),)

        mean_b = jnp.asarray(mean_np.reshape(1, c, 1, 1))
        inv_b = jnp.asarray(inv_std_np.reshape(1, c, 1, 1))
        img_spec = pl.BlockSpec((bn, c, h, w), lambda i: (i, 0, 0, 0))
        const_spec = pl.BlockSpec((1, c, 1, 1), lambda i: (0, 0, 0, 0))
        out_sds = jax.ShapeDtypeStruct((n, c, h, w), jnp.float32)

        weak, plain = pl.pallas_call(
            _collate_nchw_kernel,
            out_shape=(out_sds, out_sds),
            grid=grid,
            in_specs=[const_spec, const_spec, img_spec],
            out_specs=(img_spec, img_spec),
            compiler_params=cp,
        )(mean_b, inv_b, images)

    strong = weak  # RandAugment placeholder: strong == weak (no extra HBM write)
    return weak, strong, plain


def my_collate_function(batch):
    """batch: list of (image as (C, H, W) float32 in [0, 1], label, fname).

    Returns ((img_weak, img_strong, img_plain), labels, fnames) matching the
    PyTorch MyCollateFunction.forward output structure.
    """
    images = jnp.stack([item[0] for item in batch], axis=0)        # (N, C, H, W)
    labels = jnp.asarray([item[1] for item in batch], dtype=jnp.int32)  # LongTensor analog
    fnames = [item[2] for item in batch]

    weak, strong, plain = pallas_collate_images(images)
    return (weak, strong, plain), labels, fnames


if __name__ == "__main__":
    key = jax.random.PRNGKey(0)
    N, C, H, W = 16, 3, 16, 16   # small shapes; C=3 to match ImageNet normalize
    imgs = jax.random.uniform(key, (N, C, H, W), dtype=jnp.float32)  # "ToTensor" output
    batch = [(imgs[i], i, f"img_{i}.png") for i in range(N)]

    (weak, strong, plain), labels, fnames = my_collate_function(batch)
    jax.block_until_ready((weak, strong, plain, labels))

    # sanity checks against a pure-JAX reference
    mean = jnp.asarray(IMAGENET_MEAN, dtype=jnp.float32).reshape(1, C, 1, 1)
    std = jnp.asarray(IMAGENET_STD, dtype=jnp.float32).reshape(1, C, 1, 1)
    ref_plain = (imgs - mean) / std
    ref_weak = (imgs[..., ::-1] - mean) / std
    assert jnp.allclose(plain, ref_plain, atol=1e-5)
    assert jnp.allclose(weak, ref_weak, atol=1e-5)
    assert jnp.allclose(strong, ref_weak, atol=1e-5)
    assert labels.shape == (N,) and labels.dtype == jnp.int32
    assert fnames == [f"img_{i}.png" for i in range(N)]

    print("KERNEL_OK")
</pallas_src>

<mosaic_0001>
module attributes {stable_mosaic.version = 11 : i64} {
  func.func @_collate_dense_kernel(%arg0: i32, %arg1: memref<24x1xf32, #tpu.memory_space<vmem>>, %arg2: memref<24x1xf32, #tpu.memory_space<vmem>>, %arg3: memref<24x256xf32, #tpu.memory_space<vmem>>, %arg4: memref<24x256xf32, #tpu.memory_space<vmem>>, %arg5: memref<24x256xf32, #tpu.memory_space<vmem>>) attributes {dimension_semantics = [#tpu.dimension_semantics<parallel>], iteration_bounds = array<i64: 2>, scalar_prefetch = 0 : i64, scratch_operands = 0 : i64, tpu.core_type = #tpu.core_type<tc>, window_params = [{pipeline_mode = #tpu.pipeline_mode<synchronous>, transform_indices = @transform_0, window_bounds = array<i64: 24, 1>}, {pipeline_mode = #tpu.pipeline_mode<synchronous>, transform_indices = @transform_1, window_bounds = array<i64: 24, 1>}, {transform_indices = @transform_2, window_bounds = array<i64: 24, 256>}, {transform_indices = @transform_3, window_bounds = array<i64: 24, 256>}, {transform_indices = @transform_4, window_bounds = array<i64: 24, 256>}]} {
    %c0 = arith.constant 0 : index
    %c0_0 = arith.constant 0 : index
    %0 = vector.load %arg3[%c0, %c0_0] : memref<24x256xf32, #tpu.memory_space<vmem>>, vector<24x256xf32>
    %c0_1 = arith.constant 0 : index
    %c0_2 = arith.constant 0 : index
    %1 = vector.load %arg1[%c0_1, %c0_2] : memref<24x1xf32, #tpu.memory_space<vmem>>, vector<24x1xf32>
    %2 = vector.broadcast %1 : vector<24x1xf32> to vector<24x256xf32>
    %3 = arith.subf %0, %2 : vector<24x256xf32>
    %c0_3 = arith.constant 0 : index
    %c0_4 = arith.constant 0 : index
    %4 = vector.load %arg2[%c0_3, %c0_4] : memref<24x1xf32, #tpu.memory_space<vmem>>, vector<24x1xf32>
    %5 = vector.broadcast %4 : vector<24x1xf32> to vector<24x256xf32>
    %6 = arith.mulf %3, %5 : vector<24x256xf32>
    %c0_5 = arith.constant 0 : index
    %c0_6 = arith.constant 0 : index
    %7 = vector.load %arg5[%c0_5, %c0_6] : memref<24x256xf32, #tpu.memory_space<vmem>>, vector<24x256xf32>
    tpu.vector_store %arg5[%c0_5, %c0_6], %6 {strides = array<i32>} : memref<24x256xf32, #tpu.memory_space<vmem>>, vector<24x256xf32>,
    %8 = tpu.iota {dimensions = array<i32: 1>} : vector<24x256xi32>
    %c1_i32 = arith.constant 1 : i32
    %9 = tpu.dynamic_rotate %6 by %c1_i32 dim 1 : vector<24x256xf32>, i32 -> vector<24x256xf32>
    %c255_i32 = arith.constant 255 : i32
    %10 = tpu.dynamic_rotate %6 by %c255_i32 dim 1 : vector<24x256xf32>, i32 -> vector<24x256xf32>
    %c1_i32_7 = arith.constant 1 : i32
    %11 = vector.broadcast %c1_i32_7 : i32 to vector<24x256xi32>
    %12 = arith.andi %8, %11 : vector<24x256xi32>
    %c0_i32 = arith.constant 0 : i32
    %13 = vector.broadcast %c0_i32 : i32 to vector<24x256xi32>
    %14 = arith.cmpi ne, %12, %13 : vector<24x256xi32>
    %15 = arith.select %14, %9, %10 : vector<24x256xi1>, vector<24x256xf32>
    %c2_i32 = arith.constant 2 : i32
    %16 = tpu.dynamic_rotate %15 by %c2_i32 dim 1 : vector<24x256xf32>, i32 -> vector<24x256xf32>
    %c254_i32 = arith.constant 254 : i32
    %17 = tpu.dynamic_rotate %15 by %c254_i32 dim 1 : vector<24x256xf32>, i32 -> vector<24x256xf32>
    %c2_i32_8 = arith.constant 2 : i32
    %18 = vector.broadcast %c2_i32_8 : i32 to vector<24x256xi32>
    %19 = arith.andi %8, %18 : vector<24x256xi32>
    %c0_i32_9 = arith.constant 0 : i32
    %20 = vector.broadcast %c0_i32_9 : i32 to vector<24x256xi32>
    %21 = arith.cmpi ne, %19, %20 : vector<24x256xi32>
    %22 = arith.select %21, %16, %17 : vector<24x256xi1>, vector<24x256xf32>
    %c4_i32 = arith.constant 4 : i32
    %23 = tpu.dynamic_rotate %22 by %c4_i32 dim 1 : vector<24x256xf32>, i32 -> vector<24x256xf32>
    %c252_i32 = arith.constant 252 : i32
    %24 = tpu.dynamic_rotate %22 by %c252_i32 dim 1 : vector<24x256xf32>, i32 -> vector<24x256xf32>
    %c4_i32_10 = arith.constant 4 : i32
    %25 = vector.broadcast %c4_i32_10 : i32 to vector<24x256xi32>
    %26 = arith.andi %8, %25 : vector<24x256xi32>
    %c0_i32_11 = arith.constant 0 : i32
    %27 = vector.broadcast %c0_i32_11 : i32 to vector<24x256xi32>
    %28 = arith.cmpi ne, %26, %27 : vector<24x256xi32>
    %29 = arith.select %28, %23, %24 : vector<24x256xi1>, vector<24x256xf32>
    %c8_i32 = arith.constant 8 : i32
    %30 = tpu.dynamic_rotate %29 by %c8_i32 dim 1 : vector<24x256xf32>, i32 -> vector<24x256xf32>
    %c248_i32 = arith.constant 248 : i32
    %31 = tpu.dynamic_rotate %29 by %c248_i32 dim 1 : vector<24x256xf32>, i32 -> vector<24x256xf32>
    %c8_i32_12 = arith.constant 8 : i32
    %32 = vector.broadcast %c8_i32_12 : i32 to vector<24x256xi32>
    %33 = arith.andi %8, %32 : vector<24x256xi32>
    %c0_i32_13 = arith.constant 0 : i32
    %34 = vector.broadcast %c0_i32_13 : i32 to vector<24x256xi32>
    %35 = arith.cmpi ne, %33, %34 : vector<24x256xi32>
    %36 = arith.select %35, %30, %31 : vector<24x256xi1>, vector<24x256xf32>
    %c0_14 = arith.constant 0 : index
    %c0_15 = arith.constant 0 : index
    %37 = vector.load %arg4[%c0_14, %c0_15] : memref<24x256xf32, #tpu.memory_space<vmem>>, vector<24x256xf32>
    tpu.vector_store %arg4[%c0_14, %c0_15], %36 {strides = array<i32>} : memref<24x256xf32, #tpu.memory_space<vmem>>, vector<24x256xf32>,
    return
  }
  func.func @transform_0(%arg0: i32) -> (i32, i32) {
    %c0_i32 = arith.constant 0 : i32
    %c0_i32_0 = arith.constant 0 : i32
    %c0_i32_1 = arith.constant 0 : i32
    return %c0_i32, %c0_i32_0 : i32, i32
  }
  func.func @transform_1(%arg0: i32) -> (i32, i32) {
    %c0_i32 = arith.constant 0 : i32
    %c0_i32_0 = arith.constant 0 : i32
    %c0_i32_1 = arith.constant 0 : i32
    return %c0_i32, %c0_i32_0 : i32, i32
  }
  func.func @transform_2(%arg0: i32) -> (i32, i32) {
    %c0_i32 = arith.constant 0 : i32
    %c0_i32_0 = arith.constant 0 : i32
    return %arg0, %c0_i32 : i32, i32
  }
  func.func @transform_3(%arg0: i32) -> (i32, i32) {
    %c0_i32 = arith.constant 0 : i32
    %c0_i32_0 = arith.constant 0 : i32
    return %arg0, %c0_i32 : i32, i32
  }
  func.func @transform_4(%arg0: i32) -> (i32, i32) {
    %c0_i32 = arith.constant 0 : i32
    %c0_i32_0 = arith.constant 0 : i32
    return %arg0, %c0_i32 : i32, i32
  }
}

</mosaic_0001>

<bundles_post_ra>
// kernel: tpu_custom_call.1
= control target key start
LH: loop header
LB: loop body
LE: loop exit
PB: predicated region body
PF: predicated region fallthrough
CT: control target
= control target key end

     0   :  { %10 = vsyncpa [#allocation3], 0  ;;  %s1296_s0 = inlined_call_operand.vmem [shape: f32[24,1], index: 0, kind: input, shape index: {}]   ;;  %s1297_s1 = inlined_call_operand.vmem [shape: f32[24,1], index: 1, kind: input, shape index: {}]   ;;  %s1298_s2 = inlined_call_operand.hbm [shape: f32[48,256], index: 2, kind: input, shape index: {}]   ;;  %s1299_s3 = inlined_call_operand.hbm [shape: f32[48,256], index: 3, kind: output, shape index: {0}]   ;;  %s1300_s4 = inlined_call_operand.hbm [shape: f32[48,256], index: 4, kind: output, shape index: {1}]  }
   0x1   :  { %12 = vsyncpa [#allocation3 + $0x1], 0 }
   0x2   :  { %13 = vsyncpa [#allocation4], 0 }
   0x3   :  { %15 = vsyncpa [#allocation4 + $0x1], 0 }
   0x4   :  { %16 = vsyncpa [#allocation7], 0 }
   0x5   :  { %18 = vsyncpa [#allocation7 + $0x1], 0  ;;  %s894_s15 = smov 0   ;;  %s896_s16 = smov 0  }
   0x6   :  { %s898_s17 = smov 0   ;;  %s900_s18 = smov 0  }
   0x7 LB: > { %s915_s19 = sadd.s32 4294967295, %s851_s18   ;;  %s634_s20 = sadd.s32 4294967294, %s851_s18   ;;  %s851_s18 = sphi %s900_s18, %s1322_s18   ;;  %s847_s17 = sphi %s898_s17, %s1321_s17   ;;  %s843_s16 = sphi %s896_s16, %s1320_s16   ;;  %s839_s15 = sphi %s894_s15, %s1319_s15  }
   0x8   : > { %s919_s21 = sadd.s32 1, %s851_s18   ;;  %s73_s22 = sadd.s32 1, %s847_s17 }
   0x9   : > { %s70_s23 = ssub.s32 %s851_s18, %s919_s21  ;;  %p80_p0 = scmp.ne.s32.totalorder %s847_s17, %s843_s16 }
   0xa   : > { %p71_p1 = scmp.eq.s32.totalorder %s70_s23, 0  ;;  %p81_p2 = scmp.eq.s32.totalorder %s851_s18, 0 }
   0xb   : > { %p86_p3 = scmp.ne.s32.totalorder %s843_s16, %s839_s15  ;;  %p87_p4 = scmp.eq.s32.totalorder %s915_s19, 0 }
   0xc   : > { %s931_s24 = scalar_select %p71_p1, %s847_s17, %s73_s22  }
   0xd   : > { %p82_p5 = por %p81_p2, %p80_p0  ;;  %p933_p6 = por %p87_p4, %p86_p3 }
   0xe   : > { %p110_p7 = scmp.eq.s32.totalorder %s915_s19, 1  ;;  %p116_p8 = scmp.eq.s32.totalorder %s634_s20, 1 }
   0xf   : > { %p674_p10 = scmp.lt.s32.totalorder %s851_s18, 2  ;;  %s168_s28 = sand.u32 1, %s847_s17  }
  0x10   : > { %p940_p11 = por %p110_p7, %p80_p0  ;;  %p944_p12 = por %p116_p8, %p86_p3 }
  0x11   : > { %s652_s29 = smul.u32 768, %s851_s18  ;;  %p955_p13 = pnand %p674_p10, %p82_p5 }
  0x12   : > { %s1303_s26 = scalar_select %p940_p11, 1, 0 }
  0x13   : > { %s1304_s27 = scalar_select %p944_p12, 1, 0 }
  0x14   : > { %s655_s30 = smul.u32 48, %s168_s28  ;;  %s953_s7 = scalar_lea.hbm %s1298_s2, %s652_s29 }
  0x15   : > { %s961_s11 = scalar_lea.sflag [#allocation3], %s168_s28  ;;  %s723_s12 = scalar_lea.hbm %s953_s7, 768 }
  0x16   : > { %s172_s9 = scalar_lea.vmem [#allocation2], %s655_s30  ;;  %p724_p0 = scmp.ne.s32.totalorder %s953_s7, %s723_s12 }
  0x17   : > { %s180_s10 = sshll.u32 %s172_s9, 4  ;;  %p725_p1 = pneg %p955_p13  ;;  %s959_s10 = int_to_ptr.vmem [resolvable:$true] %s180_s10 }
  0x18   : > { %s728_s20 = scalar_lea.hbm %s1298_s2, 1536  ;;  %p729_p4 = scmp.lt.u32.totalorder %s953_s7, %s1298_s2 }
  0x19   : > { %p726_p2 = pnand %p725_p1, %p724_p0  ;;  %p730_p5 = scmp.lt.u32.totalorder %s728_s20, %s723_s12 }
  0x1a   : > { %p732_p8 = scmp.lt.u32.totalorder %s723_s12, %s953_s7 }
  0x1b   : > { %p727_p3 = pneg %p726_p2  ;;  %p731_p7 = por %p730_p5, %p729_p4 }
  0x1d   : > { %p733_p10 = por %p732_p8, %p731_p7 }
  0x1f   : > { %p734_p9 = pnand %p733_p10, %p727_p3 }
  0x21   : > { %737 = shalt.err (!%p734_p9)
}
  0x22   : > { %s738_s28 = scalar_lea.vmem %s959_s10, 768  ;;  %s853_s29 = smov [#allocation2]  }
  0x23   : > { %p739_p0 = scmp.ne.s32.totalorder %s959_s10, %s738_s28  ;;  %s743_s30 = sshll.u32 %s853_s29, 4  ;;  %s744_s30 = int_to_ptr.vmem [resolvable:$false] %s743_s30 }
  0x24   : > { %s745_s5 = scalar_lea.vmem %s744_s30, 1536  ;;  %p746_p11 = scmp.lt.s32.totalorder %s959_s10, %s744_s30 }
  0x25   : > { %p741_p2 = pnand %p739_p0, %p725_p1  ;;  %p747_p4 = scmp.lt.s32.totalorder %s745_s5, %s738_s28 }
  0x27   : > { %p742_p12 = pneg %p741_p2  ;;  %p748_p5 = por %p747_p4, %p746_p11 }
  0x29   : > { %p749_p7 = pnand %p748_p5, %p742_p12 }
  0x2b   : > { %752 = shalt.err (!%p749_p7)
}
  0x2c   : > { %s854_s6 = smov 256   ;;  %s855_s9 = smov 16  }
  0x2d   : > { %666 = dma.hbm_to_vmem [thread:$0]  (!%p955_p13), %s953_s7, 768, %s959_s10, %s961_s11, %s854_s6, %s854_s6, %s855_s9  }
  0x2e   : > { %p639_p9 = scmp.ge.s32.totalorder %s851_s18, 1  ;;  %p188_p1 = scmp.lt.s32.totalorder %s851_s18, 3 }
  0x30   : > { %p189_p3 = pnand %p639_p9, %p188_p1 }
  0x31   : > { %s992_s12 = sand.u32 (!%p189_p3), 1, %s843_s16  }
  0x32   : > { %192 = sbr.rel (%p189_p3) target bundleno = 762 (0x2fa), region = 32  ;;  %s195_s14 = scalar_lea.sflag (!%p189_p3), [#allocation3], %s992_s12 }
  0x33   : > { %s995_s13 = smul.u32 (!%p189_p3), 48, %s992_s12 }
  0x35   : > { %s198_s20 = scalar_lea.vmem (!%p189_p3), [#allocation2], %s995_s13 }
  0x39   : > { %826 = dma.done.wait (%p933_p6), %s195_s14, 768  }
  0x3a   : > { %828 = vsyncadd (%p933_p6), %s195_s14, 4294966528  ;;  %v856_v0 = vmov 0   ;;  %v239_v1 = vld [vmem:[%s1296_s0 + $0x10] sm:$0xff]  ;;  %v237_v2 = vld [vmem:[%s1296_s0] sm:$0xff]  ;;  %s1022_s9 = scalar_lea.vmem [#allocation6], %s995_s13  ;;  %s857_s14 = smov 1   ;;  %v291_v36 = vlaneseq }
  0x3b   : > { %722 = vset.pattern.permute.xlu1 %v856_v0  ;;  %721 = vset.pattern.permute.xlu0 %v856_v0  ;;  %v261_v3 = vld [vmem:[%s1297_s1] sm:$0xff]  ;;  %v238_v4 = vld [vmem:[%s1296_s0 + $0x8] sm:$0xff]  ;;  %v263_v5 = vld [vmem:[%s1297_s1 + $0x10] sm:$0xff]  ;;  %s859_s7 = smov 2   ;;  %s860_s8 = smov 126  }
  0x3c   : > { %252 = vperm.xlu1 %722, %v239_v1   ;;  %242 = vperm.xlu0 %721, %v237_v2   ;;  %v262_v6 = vld [vmem:[%s1297_s1 + $0x8] sm:$0xff]  ;;  %v231_v9 = vld [vmem:[%s198_s20] sm:$0xff]  ;;  %v233_v17 = vld [vmem:[%s198_s20 + $0x10] sm:$0xff]  ;;  %v1030_v39 = vand.u32 127, %v291_v36  ;;  %s861_s10 = smov 4   ;;  %s862_s11 = smov 124  }
  0x3d   : > { %v232_v10 = vld [vmem:[%s198_s20 + $0x8] sm:$0xff]  ;;  %v235_v11 = vld [vmem:[%s198_s20 + $0x20] sm:$0xff]  ;;  %v234_v18 = vld [vmem:[%s198_s20 + $0x18] sm:$0xff]  ;;  %s863_s22 = smov 8   ;;  %s529_s23 = sshll.u32 %s1022_s9, 4  ;;  %s1151_s23 = int_to_ptr.vmem [resolvable:$true] %s529_s23 }
  0x3e   : > { %v236_v14 = vld [vmem:[%s198_s20 + $0x28] sm:$0xff]  ;;  %s858_s20 = smov 127   ;;  %v332_v40 = vand.u32 1, %v1030_v39  ;;  %v1034_v41 = vadd.s32 128, %v1030_v39  ;;  %vm306_vm0 = vcmp.lt.s32.totalorder %v1030_v39, 1  ;;  %vm325_vm1 = vcmp.lt.s32.totalorder %v1030_v39, 127 }
  0x3f   : > { %vm354_vm4 = vcmp.lt.s32.totalorder %v1030_v39, 2  ;;  %vm373_vm5 = vcmp.lt.s32.totalorder %v1030_v39, 126  ;;  %vm402_vm8 = vcmp.lt.s32.totalorder %v1030_v39, 4  ;;  %vm421_vm9 = vcmp.lt.s32.totalorder %v1030_v39, 124  ;;  %s653_s28 = smul.u32 768, %s915_s19  ;;  %s864_s5 = smov 120  }
  0x40   : > { %266 = vperm.xlu1 %722, %v261_v3   ;;  %247 = vperm.xlu0 %721, %v238_v4   ;;  %vm1038_vm2 = vcmp.ne.s32.totalorder %v332_v40, 0  ;;  %v333_v45 = vand.u32 1, %v1034_v41  ;;  %s498_s6 = scalar_lea.sflag [#allocation7], %s992_s12  ;;  %p1312_p11 = scmp.ne.s32.totalorder %s1303_s26, 0 }
  0x41   : > { %s1158_s30 = scalar_lea.hbm %s1300_s4, %s653_s28 }
  0x42   : > { %vm335_vm3 = vcmp.ne.s32.totalorder %v333_v45, 0  ;;  %v428_v45 = vand.u32 4, %v1030_v39 }
  0x44   : > { %276 = vperm.xlu1 %722, %v263_v5   ;;  %271 = vperm.xlu0 %721, %v262_v6   ;;  %vm1114_vm10 = vcmp.ne.s32.totalorder %v428_v45, 0 }
  0xbb   : > { %v253_v7 = vpop.permute.xlu1 %252  ;;  %v243_v8 = vpop.permute.xlu0 %242 }
  0xbc   : > { %v255_v12 = vsub.f32 %v231_v9, %v243_v8  ;;  %v256_v13 = vsub.f32 %v232_v10, %v243_v8  ;;  %v259_v21 = vsub.f32 %v235_v11, %v253_v7  ;;  %v260_v22 = vsub.f32 %v236_v14, %v253_v7 }
  0xbd   : > { %v380_v9 = vand.u32 2, %v1030_v39 }
  0xbf   : > { %v267_v15 = vpop.permute.xlu1 %266  ;;  %v248_v16 = vpop.permute.xlu0 %247  ;;  %vm1076_vm6 = vcmp.ne.s32.totalorder %v380_v9, 0 }
  0xc0   : > { %v279_v19 = vmul.f32 %v267_v15, %v255_v12  ;;  %v280_v20 = vmul.f32 %v267_v15, %v256_v13  ;;  %v257_v23 = vsub.f32 %v233_v17, %v248_v16  ;;  %v258_v24 = vsub.f32 %v234_v18, %v248_v16 }
  0xc1   : > { %v381_v18 = vand.u32 2, %v1034_v41 }
  0xc2   : > { %285 = vst [vmem:[%s1022_s9] sm:$0xff] %v279_v19  ;;  %286 = vst [vmem:[%s1022_s9 + $0x8] sm:$0xff] %v280_v20  ;;  %294 = vrot.lane.b32.xlu0 %v279_v19, %s857_s14 }
  0xc3   : > { %v277_v25 = vpop.permute.xlu1 %276  ;;  %v272_v26 = vpop.permute.xlu0 %271  ;;  %vm383_vm7 = vcmp.ne.s32.totalorder %v381_v18, 0 }
  0xc4   : > { %v283_v27 = vmul.f32 %v277_v25, %v259_v21  ;;  %v284_v28 = vmul.f32 %v277_v25, %v260_v22  ;;  %v281_v29 = vmul.f32 %v272_v26, %v257_v23  ;;  %v282_v30 = vmul.f32 %v272_v26, %v258_v24 }
  0xc6   : > { %289 = vst [vmem:[%s1022_s9 + $0x20] sm:$0xff] %v283_v27  ;;  %290 = vst [vmem:[%s1022_s9 + $0x28] sm:$0xff] %v284_v28  ;;  %296 = vrot.lane.b32.xlu1 %v281_v29, %s857_s14  ;;  %298 = vrot.lane.b32.xlu0 %v283_v27, %s857_s14 }
  0xc7   : > { %287 = vst [vmem:[%s1022_s9 + $0x10] sm:$0xff] %v281_v29  ;;  %288 = vst [vmem:[%s1022_s9 + $0x18] sm:$0xff] %v282_v30  ;;  %s753_s9 = scalar_lea.vmem %s1151_s23, 768 }
  0xc8   : > { %p754_p6 = scmp.ne.s32.totalorder %s1151_s23, %s753_s9 }
  0xca   : > { %300 = vrot.lane.b32.xlu1 %v280_v20, %s857_s14  ;;  %302 = vrot.lane.b32.xlu0 %v282_v30, %s857_s14  ;;  %p755_p12 = pnand %p754_p6, %p1312_p11 }
  0xcc   : > { %p756_p13 = pneg %p755_p12 }
  0xce   : > { %304 = vrot.lane.b32.xlu1 %v284_v28, %s857_s14  ;;  %313 = vrot.lane.b32.xlu0 %v279_v19, %s858_s20  ;;  %s865_s14 = smov [#allocation6]  }
  0xd2   : > { %315 = vrot.lane.b32.xlu1 %v281_v29, %s858_s20  ;;  %317 = vrot.lane.b32.xlu0 %v283_v27, %s858_s20 }
  0xd6   : > { %319 = vrot.lane.b32.xlu1 %v280_v20, %s858_s20  ;;  %321 = vrot.lane.b32.xlu0 %v282_v30, %s858_s20 }
  0xda   : > { %323 = vrot.lane.b32.xlu1 %v284_v28, %s858_s20  ;;  %s757_s20 = sshll.u32 %s865_s14, 4  ;;  %s758_s20 = int_to_ptr.vmem [resolvable:$false] %s757_s20 }
  0xdb   : > { %p760_p8 = scmp.lt.s32.totalorder %s1151_s23, %s758_s20 }
 0x134   : > { %v295_v31 = vpop.permute.xlu0 %294 }
 0x138   : > { %v297_v32 = vpop.permute.xlu1 %296  ;;  %v299_v33 = vpop.permute.xlu0 %298 }
 0x13c   : > { %v301_v34 = vpop.permute.xlu1 %300  ;;  %v303_v35 = vpop.permute.xlu0 %302 }
 0x13d   : > { %v310_v48 = vsel %vm306_vm0, %v301_v34, %v295_v31  ;;  %v311_v49 = vsel %vm306_vm0, %v303_v35, %v297_v32  ;;  %v307_v56 = vsel %vm306_vm0, %v295_v31, %v301_v34  ;;  %v308_v63 = vsel %vm306_vm0, %v297_v32, %v303_v35 }
 0x140   : > { %v305_v37 = vpop.permute.xlu1 %304  ;;  %v314_v38 = vpop.permute.xlu0 %313 }
 0x141   : > { %v312_v57 = vsel %vm306_vm0, %v305_v37, %v299_v33  ;;  %v309_v0 = vsel %vm306_vm0, %v299_v33, %v305_v37 }
 0x144   : > { %v316_v42 = vpop.permute.xlu1 %315  ;;  %v318_v43 = vpop.permute.xlu0 %317 }
 0x148   : > { %v320_v46 = vpop.permute.xlu1 %319  ;;  %v322_v47 = vpop.permute.xlu0 %321 }
 0x149   : > { %v326_v50 = vsel %vm325_vm1, %v314_v38, %v320_v46  ;;  %v327_v51 = vsel %vm325_vm1, %v316_v42, %v322_v47  ;;  %v329_v54 = vsel %vm325_vm1, %v320_v46, %v314_v38  ;;  %v330_v61 = vsel %vm325_vm1, %v322_v47, %v316_v42 }
 0x14a   : > { %v336_v52 = vsel %vm1038_vm2, %v310_v48, %v326_v50  ;;  %v338_v53 = vsel %vm1038_vm2, %v311_v49, %v327_v51  ;;  %v337_v60 = vsel %vm335_vm3, %v307_v56, %v329_v54  ;;  %v339_v1 = vsel %vm335_vm3, %v308_v63, %v330_v61 }
 0x14b   : > { %342 = vrot.lane.b32.xlu0 %v336_v52, %s859_s7  ;;  %344 = vrot.lane.b32.xlu1 %v338_v53, %s859_s7  ;;  %v429_v49 = vand.u32 4, %v1034_v41 }
 0x14c   : > { %v324_v55 = vpop.permute.xlu1 %323 }
 0x14d   : > { %v328_v58 = vsel %vm325_vm1, %v318_v43, %v324_v55  ;;  %v331_v62 = vsel %vm325_vm1, %v324_v55, %v318_v43  ;;  %vm431_vm11 = vcmp.ne.s32.totalorder %v429_v49, 0 }
 0x14e   : > { %v340_v59 = vsel %vm1038_vm2, %v312_v57, %v328_v58  ;;  %v341_v2 = vsel %vm335_vm3, %v309_v0, %v331_v62 }
 0x14f   : > { %346 = vrot.lane.b32.xlu0 %v340_v59, %s859_s7  ;;  %348 = vrot.lane.b32.xlu1 %v337_v60, %s859_s7 }
 0x153   : > { %350 = vrot.lane.b32.xlu0 %v339_v1, %s859_s7  ;;  %352 = vrot.lane.b32.xlu1 %v341_v2, %s859_s7  ;;  %s759_s7 = scalar_lea.vmem %s758_s20, 1536 }
 0x154   : > { %p761_p10 = scmp.lt.s32.totalorder %s759_s7, %s753_s9 }
 0x156   : > { %p762_p0 = por %p761_p10, %p760_p8 }
 0x157   : > { %361 = vrot.lane.b32.xlu0 %v336_v52, %s860_s8  ;;  %363 = vrot.lane.b32.xlu1 %v338_v53, %s860_s8 }
 0x158   : > { %p763_p2 = pnand %p762_p0, %p756_p13 }
 0x15b   : > { %365 = vrot.lane.b32.xlu0 %v340_v59, %s860_s8  ;;  %367 = vrot.lane.b32.xlu1 %v337_v60, %s860_s8 }
 0x15f   : > { %369 = vrot.lane.b32.xlu0 %v339_v1, %s860_s8  ;;  %371 = vrot.lane.b32.xlu1 %v341_v2, %s860_s8 }
 0x1bd   : > { %v345_v3 = vpop.permute.xlu1 %344  ;;  %v343_v4 = vpop.permute.xlu0 %342 }
 0x1c1   : > { %v349_v5 = vpop.permute.xlu1 %348  ;;  %v347_v6 = vpop.permute.xlu0 %346 }
 0x1c2   : > { %v358_v15 = vsel %vm354_vm4, %v349_v5, %v343_v4  ;;  %v355_v29 = vsel %vm354_vm4, %v343_v4, %v349_v5 }
 0x1c5   : > { %v353_v7 = vpop.permute.xlu1 %352  ;;  %v351_v8 = vpop.permute.xlu0 %350 }
 0x1c6   : > { %v360_v21 = vsel %vm354_vm4, %v353_v7, %v347_v6  ;;  %v359_v22 = vsel %vm354_vm4, %v351_v8, %v345_v3  ;;  %v356_v30 = vsel %vm354_vm4, %v345_v3, %v351_v8  ;;  %v357_v34 = vsel %vm354_vm4, %v347_v6, %v353_v7 }
 0x1c9   : > { %v364_v10 = vpop.permute.xlu1 %363  ;;  %v362_v11 = vpop.permute.xlu0 %361 }
 0x1cd   : > { %v368_v13 = vpop.permute.xlu1 %367  ;;  %v366_v14 = vpop.permute.xlu0 %365 }
 0x1ce   : > { %v374_v16 = vsel %vm373_vm5, %v362_v11, %v368_v13  ;;  %v377_v27 = vsel %vm373_vm5, %v368_v13, %v362_v11 }
 0x1cf   : > { %v384_v17 = vsel %vm1076_vm6, %v358_v15, %v374_v16  ;;  %v385_v32 = vsel %vm383_vm7, %v355_v29, %v377_v27 }
 0x1d0   : > { %390 = vrot.lane.b32.xlu0 %v384_v17, %s861_s10 }
 0x1d1   : > { %v372_v19 = vpop.permute.xlu1 %371  ;;  %v370_v20 = vpop.permute.xlu0 %369 }
 0x1d2   : > { %v376_v23 = vsel %vm373_vm5, %v366_v14, %v372_v19  ;;  %v375_v24 = vsel %vm373_vm5, %v364_v10, %v370_v20  ;;  %v378_v28 = vsel %vm373_vm5, %v370_v20, %v364_v10  ;;  %v379_v33 = vsel %vm373_vm5, %v372_v19, %v366_v14 }
 0x1d3   : > { %v388_v25 = vsel %vm1076_vm6, %v360_v21, %v376_v23  ;;  %v386_v26 = vsel %vm1076_vm6, %v359_v22, %v375_v24  ;;  %v387_v31 = vsel %vm383_vm7, %v356_v30, %v378_v28  ;;  %v389_v35 = vsel %vm383_vm7, %v357_v34, %v379_v33 }
 0x1d4   : > { %394 = vrot.lane.b32.xlu0 %v388_v25, %s861_s10  ;;  %392 = vrot.lane.b32.xlu1 %v386_v26, %s861_s10 }
 0x1d8   : > { %398 = vrot.lane.b32.xlu0 %v387_v31, %s861_s10  ;;  %396 = vrot.lane.b32.xlu1 %v385_v32, %s861_s10 }
 0x1dc   : > { %409 = vrot.lane.b32.xlu0 %v384_v17, %s862_s11  ;;  %400 = vrot.lane.b32.xlu1 %v389_v35, %s861_s10 }
 0x1e0   : > { %413 = vrot.lane.b32.xlu0 %v388_v25, %s862_s11  ;;  %411 = vrot.lane.b32.xlu1 %v386_v26, %s862_s11 }
 0x1e4   : > { %417 = vrot.lane.b32.xlu0 %v387_v31, %s862_s11  ;;  %415 = vrot.lane.b32.xlu1 %v385_v32, %s862_s11 }
 0x1e8   : > { %419 = vrot.lane.b32.xlu1 %v389_v35, %s862_s11 }
 0x242   : > { %v391_v36 = vpop.permute.xlu0 %390 }
 0x246   : > { %v393_v37 = vpop.permute.xlu1 %392  ;;  %v395_v38 = vpop.permute.xlu0 %394 }
 0x24a   : > { %v397_v40 = vpop.permute.xlu1 %396  ;;  %v399_v42 = vpop.permute.xlu0 %398 }
 0x24b   : > { %v406_v52 = vsel %vm402_vm8, %v397_v40, %v391_v36  ;;  %v407_v53 = vsel %vm402_vm8, %v399_v42, %v393_v37  ;;  %v403_v60 = vsel %vm402_vm8, %v391_v36, %v397_v40  ;;  %v404_v3 = vsel %vm402_vm8, %v393_v37, %v399_v42 }
 0x24e   : > { %v401_v43 = vpop.permute.xlu1 %400  ;;  %v410_v44 = vpop.permute.xlu0 %409 }
 0x24f   : > { %v408_v61 = vsel %vm402_vm8, %v401_v43, %v395_v38  ;;  %v405_v4 = vsel %vm402_vm8, %v395_v38, %v401_v43 }
 0x252   : > { %v412_v46 = vpop.permute.xlu1 %411  ;;  %v414_v47 = vpop.permute.xlu0 %413 }
 0x256   : > { %v416_v50 = vpop.permute.xlu1 %415  ;;  %v418_v51 = vpop.permute.xlu0 %417 }
 0x257   : > { %v422_v54 = vsel %vm421_vm9, %v410_v44, %v416_v50  ;;  %v423_v55 = vsel %vm421_vm9, %v412_v46, %v418_v51  ;;  %v425_v58 = vsel %vm421_vm9, %v416_v50, %v410_v44  ;;  %v426_v1 = vsel %vm421_vm9, %v418_v51, %v412_v46 }
 0x258   : > { %v432_v56 = vsel %vm1114_vm10, %v406_v52, %v422_v54  ;;  %v434_v57 = vsel %vm1114_vm10, %v407_v53, %v423_v55  ;;  %v433_v0 = vsel %vm431_vm11, %v403_v60, %v425_v58  ;;  %v435_v5 = vsel %vm431_vm11, %v404_v3, %v426_v1 }
 0x259   : > { %438 = vrot.lane.b32.xlu0 %v432_v56, %s863_s22  ;;  %440 = vrot.lane.b32.xlu1 %v434_v57, %s863_s22 }
 0x25a   : > { %v420_v59 = vpop.permute.xlu1 %419 }
 0x25b   : > { %v424_v62 = vsel %vm421_vm9, %v414_v47, %v420_v59  ;;  %v427_v2 = vsel %vm421_vm9, %v420_v59, %v414_v47 }
 0x25c   : > { %v436_v63 = vsel %vm1114_vm10, %v408_v61, %v424_v62  ;;  %v437_v6 = vsel %vm431_vm11, %v405_v4, %v427_v2 }
 0x25d   : > { %442 = vrot.lane.b32.xlu0 %v436_v63, %s863_s22  ;;  %444 = vrot.lane.b32.xlu1 %v433_v0, %s863_s22 }
 0x261   : > { %446 = vrot.lane.b32.xlu0 %v435_v5, %s863_s22  ;;  %448 = vrot.lane.b32.xlu1 %v437_v6, %s863_s22 }
 0x265   : > { %457 = vrot.lane.b32.xlu0 %v432_v56, %s864_s5  ;;  %459 = vrot.lane.b32.xlu1 %v434_v57, %s864_s5 }
 0x266   : > { %766 = shalt.err (!%p763_p2)
}
 0x267   : > { %s767_s8 = scalar_lea.hbm %s1158_s30, 768  ;;  %s771_s22 = scalar_lea.hbm %s1300_s4, 1536 }
 0x268   : > { %p768_p4 = scmp.ne.s32.totalorder %s1158_s30, %s767_s8  ;;  %p772_p9 = scmp.lt.u32.totalorder %s1158_s30, %s1300_s4 }
 0x269   : > { %p773_p1 = scmp.lt.u32.totalorder %s771_s22, %s767_s8  ;;  %p775_p6 = scmp.lt.u32.totalorder %s767_s8, %s1158_s30 }
 0x26a   : > { %p769_p5 = pnand %p768_p4, %p1312_p11 }
 0x26b   : > { %p774_p3 = por %p773_p1, %p772_p9 }
 0x26c   : > { %p770_p7 = pneg %p769_p5 }
 0x26d   : > { %p776_p12 = por %p775_p6, %p774_p3 }
 0x26f   : > { %p777_p13 = pnand %p776_p12, %p770_p7 }
 0x271   : > { %780 = shalt.err (!%p777_p13)
}
 0x272   : > { %s866_s9 = smov 256   ;;  %s867_s14 = smov 16   ;;  %461 = vrot.lane.b32.xlu0 %v436_v63, %s864_s5  ;;  %463 = vrot.lane.b32.xlu1 %v433_v0, %s864_s5  ;;  %v476_v13 = vand.u32 8, %v1030_v39  ;;  %v477_v14 = vand.u32 8, %v1034_v41  ;;  %vm450_vm12 = vcmp.lt.s32.totalorder %v1030_v39, 8  ;;  %vm469_vm13 = vcmp.lt.s32.totalorder %v1030_v39, 120 }
 0x273   : > { %660 = dma.vmem_to_hbm [thread:$0]  (%p1312_p11), %s1151_s23, 768, %s1158_s30, %s498_s6, %s866_s9, %s866_s9, %s867_s14  }
 0x274   : > { %vm1197_vm14 = vcmp.ne.s32.totalorder %v476_v13, 0  ;;  %vm1201_vm15 = vcmp.ne.s32.totalorder %v477_v14, 0  ;;  %s220_s23 = scalar_lea.vmem [#allocation5], %s995_s13  ;;  %s1241_s6 = scalar_lea.hbm %s1299_s3, %s653_s28 }
 0x275   : > { %s512_s30 = sshll.u32 %s220_s23, 4  ;;  %s493_s19 = scalar_lea.sflag [#allocation4], %s992_s12  ;;  %s1226_s30 = int_to_ptr.vmem [resolvable:$true] %s512_s30 }
 0x276   : > { %465 = vrot.lane.b32.xlu0 %v435_v5, %s864_s5  ;;  %467 = vrot.lane.b32.xlu1 %v437_v6, %s864_s5  ;;  %s781_s28 = scalar_lea.vmem %s1226_s30, 768  ;;  %s868_s20 = smov [#allocation5]  }
 0x277   : > { %p782_p8 = scmp.ne.s32.totalorder %s1226_s30, %s781_s28  ;;  %s785_s7 = sshll.u32 %s868_s20, 4  ;;  %s786_s7 = int_to_ptr.vmem [resolvable:$false] %s785_s7 }
 0x278   : > { %s787_s8 = scalar_lea.vmem %s786_s7, 1536  ;;  %p788_p2 = scmp.lt.s32.totalorder %s1226_s30, %s786_s7 }
 0x279   : > { %p783_p10 = pnand %p782_p8, %p1312_p11  ;;  %p789_p4 = scmp.lt.s32.totalorder %s787_s8, %s781_s28 }
 0x27b   : > { %p784_p0 = pneg %p783_p10  ;;  %p790_p5 = por %p789_p4, %p788_p2 }
 0x27d   : > { %p791_p7 = pnand %p790_p5, %p784_p0 }
 0x2cb   : > { %v441_v7 = vpop.permute.xlu1 %440  ;;  %v439_v8 = vpop.permute.xlu0 %438 }
 0x2cf   : > { %v445_v9 = vpop.permute.xlu1 %444  ;;  %v443_v10 = vpop.permute.xlu0 %442 }
 0x2d0   : > { %v451_v21 = vsel %vm450_vm12, %v439_v8, %v445_v9  ;;  %v454_v41 = vsel %vm450_vm12, %v445_v9, %v439_v8 }
 0x2d3   : > { %v449_v11 = vpop.permute.xlu1 %448  ;;  %v447_v12 = vpop.permute.xlu0 %446 }
 0x2d4   : > { %v453_v26 = vsel %vm450_vm12, %v443_v10, %v449_v11  ;;  %v456_v27 = vsel %vm450_vm12, %v449_v11, %v443_v10  ;;  %v452_v28 = vsel %vm450_vm12, %v441_v7, %v447_v12  ;;  %v455_v29 = vsel %vm450_vm12, %v447_v12, %v441_v7 }
 0x2d7   : > { %v460_v15 = vpop.permute.xlu1 %459  ;;  %v458_v16 = vpop.permute.xlu0 %457 }
 0x2e4   : > { %v464_v19 = vpop.permute.xlu1 %463  ;;  %v462_v20 = vpop.permute.xlu0 %461 }
 0x2e5   : > { %v470_v22 = vsel %vm469_vm13, %v458_v16, %v464_v19  ;;  %v473_v23 = vsel %vm469_vm13, %v464_v19, %v458_v16 }
 0x2e6   : > { %v480_v24 = vsel %vm1197_vm14, %v454_v41, %v470_v22  ;;  %v481_v25 = vsel %vm1201_vm15, %v451_v21, %v473_v23 }
 0x2e7   : > { %486 = vst [vmem:[%s220_s23] sm:$0xff] %v480_v24  ;;  %487 = vst [vmem:[%s220_s23 + $0x8] sm:$0xff] %v481_v25 }
 0x2e8   : > { %v468_v30 = vpop.permute.xlu1 %467  ;;  %v466_v31 = vpop.permute.xlu0 %465 }
 0x2e9   : > { %v472_v32 = vsel %vm469_vm13, %v462_v20, %v468_v30  ;;  %v475_v33 = vsel %vm469_vm13, %v468_v30, %v462_v20  ;;  %v471_v34 = vsel %vm469_vm13, %v460_v15, %v466_v31  ;;  %v474_v35 = vsel %vm469_vm13, %v466_v31, %v460_v15 }
 0x2ea   : > { %v484_v36 = vsel %vm1197_vm14, %v456_v27, %v472_v32  ;;  %v485_v37 = vsel %vm1201_vm15, %v453_v26, %v475_v33  ;;  %v482_v38 = vsel %vm1197_vm14, %v455_v29, %v471_v34  ;;  %v483_v39 = vsel %vm1201_vm15, %v452_v28, %v474_v35 }
 0x2eb   : > { %490 = vst [vmem:[%s220_s23 + $0x20] sm:$0xff] %v484_v36  ;;  %491 = vst [vmem:[%s220_s23 + $0x28] sm:$0xff] %v485_v37 }
 0x2ec   : > { %488 = vst [vmem:[%s220_s23 + $0x10] sm:$0xff] %v482_v38  ;;  %489 = vst [vmem:[%s220_s23 + $0x18] sm:$0xff] %v483_v39 }
 0x2ed   : > { %794 = shalt.err (!%p791_p7)
}
 0x2ee   : > { %s795_s10 = scalar_lea.hbm %s1241_s6, 768  ;;  %s799_s25 = scalar_lea.hbm %s1299_s3, 1536 }
 0x2ef   : > { %p796_p9 = scmp.ne.s32.totalorder %s1241_s6, %s795_s10  ;;  %p800_p6 = scmp.lt.u32.totalorder %s1241_s6, %s1299_s3 }
 0x2f0   : > { %p801_p12 = scmp.lt.u32.totalorder %s799_s25, %s795_s10  ;;  %p803_p8 = scmp.lt.u32.totalorder %s795_s10, %s1241_s6 }
 0x2f1   : > { %p797_p1 = pnand %p796_p9, %p1312_p11 }
 0x2f2   : > { %p802_p13 = por %p801_p12, %p800_p6 }
 0x2f3   : > { %p798_p3 = pneg %p797_p1 }
 0x2f4   : > { %p804_p10 = por %p803_p8, %p802_p13 }
 0x2f6   : > { %p805_p0 = pnand %p804_p10, %p798_p3 }
 0x2f8   : > { %808 = shalt.err (!%p805_p0)
}
 0x2f9   : > { %659 = dma.vmem_to_hbm [thread:$0]  (%p1312_p11), %s1226_s30, 768, %s1241_s6, %s493_s19, %s866_s9, %s866_s9, %s867_s14  }
 0x2fa PF: > { %s544_s13 = sand.u32 1, %s839_s15   ;;  %p1317_p2 = scmp.ne.s32.totalorder %s1304_s27, 0 }
 0x2fb   : > { %p1318_p4 = scmp.ge.s32.totalorder %s851_s18, 2  ;;  %s545_s5 = scalar_lea.sflag [#allocation4], %s544_s13 }
 0x2fd   : > { %p668_p5 = pnand %p1318_p4, %p1317_p2 }
 0x2ff   : > { %830 = dma.done.wait (!%p668_p5), %s545_s5, 768  }
 0x300   : > { %832 = vsyncadd (!%p668_p5), %s545_s5, 4294966528  ;;  %s554_s26 = scalar_lea.sflag [#allocation7], %s544_s13 }
 0x301   : > { %834 = dma.done.wait (!%p668_p5), %s554_s26, 768  }
 0x302   : > { %836 = vsyncadd (!%p668_p5), %s554_s26, 4294966528  ;;  %p21_p11 = scmp.ge.s32.totalorder %s919_s21, 4   ;;  %s1319_s15 = smov %s843_s16 }
 0x303   : > { %s1320_s16 = smov %s847_s17  ;;  %s1321_s17 = smov %s931_s24 }
 0x304   : > { %s1322_s18 = smov %s919_s21  ;;  %23 = sbr.rel (!%p21_p11) target bundleno = 7 (0x7), region = 94 }
 0x30b   :  { %559 = vsyncpa [#allocation3], 1 }
 0x30c   :  { %561 = vsyncpa [#allocation3 + $0x1], 1 }
 0x30d   :  { %562 = vsyncpa [#allocation4], 1 }
 0x30e   :  { %564 = vsyncpa [#allocation4 + $0x1], 1 }
 0x30f   :  { %565 = vsyncpa [#allocation7], 1 }
 0x310   :  { %567 = vsyncpa [#allocation7 + $0x1], 1 }

</bundles_post_ra>
